<compile_context>
chip_gen: v5e
topology: v5e:2x2
jax: 0.10.0
libtpu: 0.0.40
codegen_flags: <defaults>
</compile_context>

<pallas_src>
import functools

import jax
import jax.numpy as jnp
from jax import lax
from jax.experimental import pallas as pl
from jax.experimental.pallas import tpu as pltpu


def _gather_sum_kernel(tokens_smem, emb_hbm, out_ref, rowbuf, sem, *, b_tile, seq_len):
    """Sum of gathered embedding rows for one tile of documents.

    tokens_smem : (B_pad * S,) int32 in SMEM (scalar prefetch)
    emb_hbm     : (V, D) float32, left in HBM (memory_space=pl.ANY)
    out_ref     : (b_tile, D) float32 VMEM output block for this document tile
    rowbuf      : (2, 1, D) float32 VMEM double buffer for gathered rows
    sem         : (2,) DMA semaphores
    """
    tile = pl.program_id(0)
    doc_base = tile * b_tile
    d_model = out_ref.shape[-1]

    def start_fetch(doc, s, slot):
        tok = tokens_smem[(doc_base + doc) * seq_len + s]
        pltpu.make_async_copy(
            emb_hbm.at[pl.ds(tok, 1), :], rowbuf.at[slot], sem.at[slot]
        ).start()

    def wait_fetch(slot):
        # Same transfer size as start_fetch; only the semaphore / dst matter for wait.
        pltpu.make_async_copy(
            emb_hbm.at[pl.ds(0, 1), :], rowbuf.at[slot], sem.at[slot]
        ).wait()

    # Static unroll over the documents of this tile; each document streams its
    # token rows from HBM with a 2-deep DMA pipeline and accumulates in f32 regs.
    for doc in range(b_tile):
        start_fetch(doc, 0, 0)

        def body(s, acc, doc=doc):
            slot = lax.rem(s, 2)
            wait_fetch(slot)

            @pl.when(s + 1 < seq_len)
            def _():
                start_fetch(doc, s + 1, 1 - slot)

            return acc + rowbuf[slot].astype(jnp.float32)

        doc_sum = lax.fori_loop(
            0, seq_len, body, jnp.zeros((1, d_model), jnp.float32)
        )
        out_ref[doc : doc + 1, :] = doc_sum.astype(out_ref.dtype)


def word_emb_aggregator(x_tokens, x_lens, emb_weight, word_emb_drop=0.0, doc_tile=8):
    """Pallas equivalent of WordEmbAggregator.forward (aggregation='sum').

    x_lens is accepted for API parity but unused (matches the PyTorch forward,
    which sums over the full padded sequence).
    """
    del x_lens
    B, S = x_tokens.shape
    V, D = emb_weight.shape

    # nn.Dropout(word_emb_drop): identity for p=0.0 / eval mode.
    # TODO(synk): training-mode dropout (p>0) would need pltpu.prng_* masking in-kernel.
    assert word_emb_drop == 0.0

    # Up to `doc_tile` documents per program: sublane-aligned, lane-dense output
    # blocks and enough work per grid step; tiles are independent ("parallel").
    b_tile = min(doc_tile, B)
    b_pad = pl.cdiv(B, b_tile) * b_tile

    tokens = x_tokens.astype(jnp.int32)
    if b_pad != B:
        # Pad with token id 0 (a valid row); padded output rows are sliced away.
        tokens = jnp.concatenate(
            [tokens, jnp.zeros((b_pad - B, S), dtype=jnp.int32)], axis=0
        )
    tokens_flat = tokens.reshape(-1)  # 1-D SMEM layout (avoids 2-D SMEM padding blowup)

    kernel = functools.partial(_gather_sum_kernel, b_tile=b_tile, seq_len=S)

    out = pl.pallas_call(
        kernel,
        out_shape=jax.ShapeDtypeStruct((b_pad, D), emb_weight.dtype),
        grid_spec=pltpu.PrefetchScalarGridSpec(
            num_scalar_prefetch=1,                     # tokens -> SMEM
            grid=(b_pad // b_tile,),
            in_specs=[
                pl.BlockSpec(memory_space=pl.ANY),     # emb table stays in HBM
            ],
            out_specs=pl.BlockSpec((b_tile, D), lambda i, toks: (i, 0)),
            scratch_shapes=[
                pltpu.VMEM((2, 1, D), emb_weight.dtype),   # double-buffered gathered row
                pltpu.SemaphoreType.DMA((2,)),
            ],
        ),
        compiler_params=pltpu.CompilerParams(
            dimension_semantics=("parallel",),         # doc tiles shard across TCs on v7x
        ),
    )(tokens_flat, emb_weight)

    return out[:B]


if __name__ == "__main__":
    key = jax.random.PRNGKey(0)
    k_emb, k_tok, k_len = jax.random.split(key, 3)

    B, S = 2, 8          # batch, padded sequence length
    V, D = 32, 128       # vocab size, embedding (hidden) dim

    # Deterministic synthetic parameters / inputs (no checkpoint loading).
    emb_weight = jax.random.normal(k_emb, (V, D), dtype=jnp.float32) * 0.02
    x_tokens = jax.random.randint(k_tok, (B, S), 0, V, dtype=jnp.int32)
    x_lens = jax.random.randint(k_len, (B,), 1, S + 1, dtype=jnp.int32)  # unused

    out = word_emb_aggregator(x_tokens, x_lens, emb_weight)
    out = jax.block_until_ready(out)

    # Pure-JAX reference: embedding lookup + sum over sequence.
    ref = jnp.take(emb_weight, x_tokens, axis=0).sum(axis=1)
    assert out.shape == (B, D)
    assert jnp.allclose(out, ref, atol=1e-5, rtol=1e-5)

    print("KERNEL_OK")
</pallas_src>

<mosaic_0001>
module attributes {stable_mosaic.version = 11 : i64} {
  func.func @_gather_sum_kernel(%arg0: i32, %arg1: memref<16xi32, #tpu.memory_space<smem>>, %arg2: memref<32x128xf32, #tpu.memory_space<any>>, %arg3: memref<2x128xf32, #tpu.memory_space<vmem>>, %arg4: memref<2x1x128xf32, #tpu.memory_space<vmem>>, %arg5: memref<2x!tpu.dma_semaphore, #tpu.memory_space<semaphore_mem>>) attributes {dimension_semantics = [#tpu.dimension_semantics<parallel>], iteration_bounds = array<i64: 1>, scalar_prefetch = 1 : i64, scratch_operands = 2 : i64, tpu.core_type = #tpu.core_type<tc>, window_params = [{}, {transform_indices = @transform_1, window_bounds = array<i64: 2, 128>}]} {
    %c2_i32 = arith.constant 2 : i32
    %0 = arith.muli %arg0, %c2_i32 : i32
    %c0_i32 = arith.constant 0 : i32
    %1 = arith.addi %0, %c0_i32 : i32
    %c8_i32 = arith.constant 8 : i32
    %2 = arith.muli %1, %c8_i32 : i32
    %c0_i32_0 = arith.constant 0 : i32
    %3 = arith.addi %2, %c0_i32_0 : i32
    %4 = arith.index_cast %3 : i32 to index
    %5 = memref.load %arg1[%4] : memref<16xi32, #tpu.memory_space<smem>>
    %c0_i32_1 = arith.constant 0 : i32
    %c0_i32_2 = arith.constant 0 : i32
    %c0_i32_3 = arith.constant 0 : i32
    %6 = tpu.memref_slice %arg2[%5, %c0_i32_3] : memref<32x128xf32, #tpu.memory_space<any>> -> memref<1x128xf32, #tpu.memory_space<any>>
    %c0_i32_4 = arith.constant 0 : i32
    %c0_i32_5 = arith.constant 0 : i32
    %7 = tpu.memref_slice %arg4[%c0_i32_1, %c0_i32_4, %c0_i32_5] : memref<2x1x128xf32, #tpu.memory_space<vmem>> -> memref<1x1x128xf32, #tpu.memory_space<vmem>>
    %8 = tpu.memref_squeeze %7 : memref<1x1x128xf32, #tpu.memory_space<vmem>> -> memref<1x128xf32, #tpu.memory_space<vmem>>
    %9 = tpu.memref_slice %arg5[%c0_i32_2] : memref<2x!tpu.dma_semaphore, #tpu.memory_space<semaphore_mem>> -> memref<1x!tpu.dma_semaphore, #tpu.memory_space<semaphore_mem>>
    %10 = tpu.memref_squeeze %9 : memref<1x!tpu.dma_semaphore, #tpu.memory_space<semaphore_mem>> -> memref<!tpu.dma_semaphore, #tpu.memory_space<semaphore_mem>>
    tpu.enqueue_dma source(%6 : memref<1x128xf32, #tpu.memory_space<any>>) target(%8 : memref<1x128xf32, #tpu.memory_space<vmem>>) target_semaphore(%10 : memref<!tpu.dma_semaphore, #tpu.memory_space<semaphore_mem>>)
    %cst = arith.constant 0.000000e+00 : f32
    %11 = vector.broadcast %cst : f32 to vector<1x128xf32>
    %c0_i32_6 = arith.constant 0 : i32
    %c8_i32_7 = arith.constant 8 : i32
    %12 = arith.addi %c0_i32_6, %c8_i32_7 : i32
    %c1_i32 = arith.constant 1 : i32
    %13 = scf.for %arg6 = %c0_i32_6 to %12 step %c1_i32 iter_args(%arg7 = %11) -> (vector<1x128xf32>)  : i32 {
      %c2_i32_24 = arith.constant 2 : i32
      %29 = arith.remsi %arg6, %c2_i32_24 : i32
      %c0_i32_25 = arith.constant 0 : i32
      %c0_i32_26 = arith.constant 0 : i32
      %30 = tpu.memref_slice %arg2[%c0_i32_25, %c0_i32_26] : memref<32x128xf32, #tpu.memory_space<any>> -> memref<1x128xf32, #tpu.memory_space<any>>
      %c0_i32_27 = arith.constant 0 : i32
      %c0_i32_28 = arith.constant 0 : i32
      %31 = tpu.memref_slice %arg4[%29, %c0_i32_27, %c0_i32_28] : memref<2x1x128xf32, #tpu.memory_space<vmem>> -> memref<1x1x128xf32, #tpu.memory_space<vmem>>
      %32 = tpu.memref_squeeze %31 : memref<1x1x128xf32, #tpu.memory_space<vmem>> -> memref<1x128xf32, #tpu.memory_space<vmem>>
      %33 = tpu.memref_slice %arg5[%29] : memref<2x!tpu.dma_semaphore, #tpu.memory_space<semaphore_mem>> -> memref<1x!tpu.dma_semaphore, #tpu.memory_space<semaphore_mem>>
      %34 = tpu.memref_squeeze %33 : memref<1x!tpu.dma_semaphore, #tpu.memory_space<semaphore_mem>> -> memref<!tpu.dma_semaphore, #tpu.memory_space<semaphore_mem>>
      tpu.wait_dma2 semaphore(%34 : memref<!tpu.dma_semaphore, #tpu.memory_space<semaphore_mem>>) src(%30 : memref<1x128xf32, #tpu.memory_space<any>>) dst(%32 : memref<1x128xf32, #tpu.memory_space<vmem>>)
      %c1_i32_29 = arith.constant 1 : i32
      %35 = arith.addi %arg6, %c1_i32_29 : i32
      %c8_i32_30 = arith.constant 8 : i32
      %36 = arith.cmpi slt, %35, %c8_i32_30 : i32
      %37 = arith.extui %36 : i1 to i32
      %c0_i32_31 = arith.constant 0 : i32
      %38 = arith.cmpi ne, %37, %c0_i32_31 : i32
      scf.if %38 {
        %c1_i32_34 = arith.constant 1 : i32
        %43 = arith.addi %arg6, %c1_i32_34 : i32
        %c1_i32_35 = arith.constant 1 : i32
        %44 = arith.subi %c1_i32_35, %29 : i32
        %c0_i32_36 = arith.constant 0 : i32
        %45 = arith.addi %0, %c0_i32_36 : i32
        %c8_i32_37 = arith.constant 8 : i32
        %46 = arith.muli %45, %c8_i32_37 : i32
        %47 = arith.addi %46, %43 : i32
        %48 = arith.index_cast %47 : i32 to index
        %49 = memref.load %arg1[%48] : memref<16xi32, #tpu.memory_space<smem>>
        %c0_i32_38 = arith.constant 0 : i32
        %50 = tpu.memref_slice %arg2[%49, %c0_i32_38] : memref<32x128xf32, #tpu.memory_space<any>> -> memref<1x128xf32, #tpu.memory_space<any>>
        %c0_i32_39 = arith.constant 0 : i32
        %c0_i32_40 = arith.constant 0 : i32
        %51 = tpu.memref_slice %arg4[%44, %c0_i32_39, %c0_i32_40] : memref<2x1x128xf32, #tpu.memory_space<vmem>> -> memref<1x1x128xf32, #tpu.memory_space<vmem>>
        %52 = tpu.memref_squeeze %51 : memref<1x1x128xf32, #tpu.memory_space<vmem>> -> memref<1x128xf32, #tpu.memory_space<vmem>>
        %53 = tpu.memref_slice %arg5[%44] : memref<2x!tpu.dma_semaphore, #tpu.memory_space<semaphore_mem>> -> memref<1x!tpu.dma_semaphore, #tpu.memory_space<semaphore_mem>>
        %54 = tpu.memref_squeeze %53 : memref<1x!tpu.dma_semaphore, #tpu.memory_space<semaphore_mem>> -> memref<!tpu.dma_semaphore, #tpu.memory_space<semaphore_mem>>
        tpu.enqueue_dma source(%50 : memref<1x128xf32, #tpu.memory_space<any>>) target(%52 : memref<1x128xf32, #tpu.memory_space<vmem>>) target_semaphore(%54 : memref<!tpu.dma_semaphore, #tpu.memory_space<semaphore_mem>>)
      } else {
      }
      %39 = arith.index_cast %29 : i32 to index
      %c0_32 = arith.constant 0 : index
      %c0_33 = arith.constant 0 : index
      %40 = vector.load %arg4[%39, %c0_32, %c0_33] : memref<2x1x128xf32, #tpu.memory_space<vmem>>, vector<1x1x128xf32>
      %41 = vector.shape_cast %40 : vector<1x1x128xf32> to vector<1x128xf32>
      %42 = arith.addf %arg7, %41 : vector<1x128xf32>
      scf.yield %42 : vector<1x128xf32>
    }
    %c8_i32_8 = arith.constant 8 : i32
    %c0 = arith.constant 0 : index
    %c0_9 = arith.constant 0 : index
    %14 = vector.load %arg3[%c0, %c0_9] : memref<2x128xf32, #tpu.memory_space<vmem>>, vector<1x128xf32>
    tpu.vector_store %arg3[%c0, %c0_9], %13 {strides = array<i32>} : memref<2x128xf32, #tpu.memory_space<vmem>>, vector<1x128xf32>,
    %c1_i32_10 = arith.constant 1 : i32
    %15 = arith.addi %0, %c1_i32_10 : i32
    %c8_i32_11 = arith.constant 8 : i32
    %16 = arith.muli %15, %c8_i32_11 : i32
    %c0_i32_12 = arith.constant 0 : i32
    %17 = arith.addi %16, %c0_i32_12 : i32
    %18 = arith.index_cast %17 : i32 to index
    %19 = memref.load %arg1[%18] : memref<16xi32, #tpu.memory_space<smem>>
    %c0_i32_13 = arith.constant 0 : i32
    %c0_i32_14 = arith.constant 0 : i32
    %c0_i32_15 = arith.constant 0 : i32
    %20 = tpu.memref_slice %arg2[%19, %c0_i32_15] : memref<32x128xf32, #tpu.memory_space<any>> -> memref<1x128xf32, #tpu.memory_space<any>>
    %c0_i32_16 = arith.constant 0 : i32
    %c0_i32_17 = arith.constant 0 : i32
    %21 = tpu.memref_slice %arg4[%c0_i32_13, %c0_i32_16, %c0_i32_17] : memref<2x1x128xf32, #tpu.memory_space<vmem>> -> memref<1x1x128xf32, #tpu.memory_space<vmem>>
    %22 = tpu.memref_squeeze %21 : memref<1x1x128xf32, #tpu.memory_space<vmem>> -> memref<1x128xf32, #tpu.memory_space<vmem>>
    %23 = tpu.memref_slice %arg5[%c0_i32_14] : memref<2x!tpu.dma_semaphore, #tpu.memory_space<semaphore_mem>> -> memref<1x!tpu.dma_semaphore, #tpu.memory_space<semaphore_mem>>
    %24 = tpu.memref_squeeze %23 : memref<1x!tpu.dma_semaphore, #tpu.memory_space<semaphore_mem>> -> memref<!tpu.dma_semaphore, #tpu.memory_space<semaphore_mem>>
    tpu.enqueue_dma source(%20 : memref<1x128xf32, #tpu.memory_space<any>>) target(%22 : memref<1x128xf32, #tpu.memory_space<vmem>>) target_semaphore(%24 : memref<!tpu.dma_semaphore, #tpu.memory_space<semaphore_mem>>)
    %cst_18 = arith.constant 0.000000e+00 : f32
    %25 = vector.broadcast %cst_18 : f32 to vector<1x128xf32>
    %c0_i32_19 = arith.constant 0 : i32
    %c8_i32_20 = arith.constant 8 : i32
    %26 = arith.addi %c0_i32_19, %c8_i32_20 : i32
    %c1_i32_21 = arith.constant 1 : i32
    %27 = scf.for %arg6 = %c0_i32_19 to %26 step %c1_i32_21 iter_args(%arg7 = %25) -> (vector<1x128xf32>)  : i32 {
      %c2_i32_24 = arith.constant 2 : i32
      %29 = arith.remsi %arg6, %c2_i32_24 : i32
      %c0_i32_25 = arith.constant 0 : i32
      %c0_i32_26 = arith.constant 0 : i32
      %30 = tpu.memref_slice %arg2[%c0_i32_25, %c0_i32_26] : memref<32x128xf32, #tpu.memory_space<any>> -> memref<1x128xf32, #tpu.memory_space<any>>
      %c0_i32_27 = arith.constant 0 : i32
      %c0_i32_28 = arith.constant 0 : i32
      %31 = tpu.memref_slice %arg4[%29, %c0_i32_27, %c0_i32_28] : memref<2x1x128xf32, #tpu.memory_space<vmem>> -> memref<1x1x128xf32, #tpu.memory_space<vmem>>
      %32 = tpu.memref_squeeze %31 : memref<1x1x128xf32, #tpu.memory_space<vmem>> -> memref<1x128xf32, #tpu.memory_space<vmem>>
      %33 = tpu.memref_slice %arg5[%29] : memref<2x!tpu.dma_semaphore, #tpu.memory_space<semaphore_mem>> -> memref<1x!tpu.dma_semaphore, #tpu.memory_space<semaphore_mem>>
      %34 = tpu.memref_squeeze %33 : memref<1x!tpu.dma_semaphore, #tpu.memory_space<semaphore_mem>> -> memref<!tpu.dma_semaphore, #tpu.memory_space<semaphore_mem>>
      tpu.wait_dma2 semaphore(%34 : memref<!tpu.dma_semaphore, #tpu.memory_space<semaphore_mem>>) src(%30 : memref<1x128xf32, #tpu.memory_space<any>>) dst(%32 : memref<1x128xf32, #tpu.memory_space<vmem>>)
      %c1_i32_29 = arith.constant 1 : i32
      %35 = arith.addi %arg6, %c1_i32_29 : i32
      %c8_i32_30 = arith.constant 8 : i32
      %36 = arith.cmpi slt, %35, %c8_i32_30 : i32
      %37 = arith.extui %36 : i1 to i32
      %c0_i32_31 = arith.constant 0 : i32
      %38 = arith.cmpi ne, %37, %c0_i32_31 : i32
      scf.if %38 {
        %c1_i32_34 = arith.constant 1 : i32
        %43 = arith.addi %arg6, %c1_i32_34 : i32
        %c1_i32_35 = arith.constant 1 : i32
        %44 = arith.subi %c1_i32_35, %29 : i32
        %c1_i32_36 = arith.constant 1 : i32
        %45 = arith.addi %0, %c1_i32_36 : i32
        %c8_i32_37 = arith.constant 8 : i32
        %46 = arith.muli %45, %c8_i32_37 : i32
        %47 = arith.addi %46, %43 : i32
        %48 = arith.index_cast %47 : i32 to index
        %49 = memref.load %arg1[%48] : memref<16xi32, #tpu.memory_space<smem>>
        %c0_i32_38 = arith.constant 0 : i32
        %50 = tpu.memref_slice %arg2[%49, %c0_i32_38] : memref<32x128xf32, #tpu.memory_space<any>> -> memref<1x128xf32, #tpu.memory_space<any>>
        %c0_i32_39 = arith.constant 0 : i32
        %c0_i32_40 = arith.constant 0 : i32
        %51 = tpu.memref_slice %arg4[%44, %c0_i32_39, %c0_i32_40] : memref<2x1x128xf32, #tpu.memory_space<vmem>> -> memref<1x1x128xf32, #tpu.memory_space<vmem>>
        %52 = tpu.memref_squeeze %51 : memref<1x1x128xf32, #tpu.memory_space<vmem>> -> memref<1x128xf32, #tpu.memory_space<vmem>>
        %53 = tpu.memref_slice %arg5[%44] : memref<2x!tpu.dma_semaphore, #tpu.memory_space<semaphore_mem>> -> memref<1x!tpu.dma_semaphore, #tpu.memory_space<semaphore_mem>>
        %54 = tpu.memref_squeeze %53 : memref<1x!tpu.dma_semaphore, #tpu.memory_space<semaphore_mem>> -> memref<!tpu.dma_semaphore, #tpu.memory_space<semaphore_mem>>
        tpu.enqueue_dma source(%50 : memref<1x128xf32, #tpu.memory_space<any>>) target(%52 : memref<1x128xf32, #tpu.memory_space<vmem>>) target_semaphore(%54 : memref<!tpu.dma_semaphore, #tpu.memory_space<semaphore_mem>>)
      } else {
      }
      %39 = arith.index_cast %29 : i32 to index
      %c0_32 = arith.constant 0 : index
      %c0_33 = arith.constant 0 : index
      %40 = vector.load %arg4[%39, %c0_32, %c0_33] : memref<2x1x128xf32, #tpu.memory_space<vmem>>, vector<1x1x128xf32>
      %41 = vector.shape_cast %40 : vector<1x1x128xf32> to vector<1x128xf32>
      %42 = arith.addf %arg7, %41 : vector<1x128xf32>
      scf.yield %42 : vector<1x128xf32>
    }
    %c8_i32_22 = arith.constant 8 : i32
    %c1 = arith.constant 1 : index
    %c0_23 = arith.constant 0 : index
    %28 = vector.load %arg3[%c1, %c0_23] : memref<2x128xf32, #tpu.memory_space<vmem>>, vector<1x128xf32>
    tpu.vector_store %arg3[%c1, %c0_23], %27 {strides = array<i32>} : memref<2x128xf32, #tpu.memory_space<vmem>>, vector<1x128xf32>,
    return
  }
  func.func @transform_1(%arg0: i32, %arg1: memref<16xi32, #tpu.memory_space<smem>>) -> (i32, i32) {
    %c0_i32 = arith.constant 0 : i32
    %c0_i32_0 = arith.constant 0 : i32
    return %arg0, %c0_i32 : i32, i32
  }
}

</mosaic_0001>

<bundles_post_ra>
// kernel: tpu_custom_call.1
= control target key start
LH: loop header
LB: loop body
LE: loop exit
PB: predicated region body
PF: predicated region fallthrough
CT: control target
= control target key end

     0   :  { %s429_s12 = smov [#allocation5]   ;;  %s558_s0 = inlined_call_operand.hbm [shape: s32[16], index: 0, kind: input, shape index: {}]   ;;  %s559_s1 = inlined_call_operand.hbm [shape: f32[32,128], index: 1, kind: input, shape index: {}]   ;;  %s560_s2 = inlined_call_operand.hbm [shape: f32[2,128], index: 2, kind: output, shape index: {}]  }
   0x1   :  { %s8_s11 = sshll.u32 %s558_s0, 4  ;;  %s9_s11 = int_to_ptr.hbm [resolvable:$true] %s8_s11 }
   0x2   :  { %11 = dma.hbm_to_smem %s9_s11, 16, %s429_s12, [#allocation4] }
   0x3   :  { %405 = dma.done.wait [#allocation4], 16 }
   0x4   :  { %406 = vsyncadd [#allocation4], 4294967280 }
   0x5   :  { %14 = sfence }
   0x6   :  { %15 = vsyncpa [#allocation7], 0  ;;  %s18_s13 = sld [smem:[#allocation5]]  ;;  %s430_s14 = smov [#allocation2]  }
   0x7   :  { %s451_s15 = sshll.u32 %s430_s14, 4  ;;  %s460_s23 = scalar_lea.hbm %s559_s1, 32  ;;  %s30_s15 = int_to_ptr.vmem [resolvable:$true] %s451_s15 }
   0xc   :  { %s19_s18 = scalar_lea.hbm %s559_s1, %s18_s13 }
   0xd   :  { %s27_s19 = sshll.u32 %s19_s18, 4  ;;  %s28_s19 = int_to_ptr.hbm [resolvable:$true] %s27_s19 }
   0xe   :  { %s261_s0 = sshra.s32 %s28_s19, 4  ;;  %s262_s0 = int_to_ptr.hbm [resolvable:$true] %s261_s0 }
   0xf   :  { %s263_s20 = scalar_lea.hbm %s262_s0, 1  ;;  %p266_p1 = scmp.lt.s32.totalorder %s262_s0, %s559_s1 }
  0x10   :  { %p264_p0 = scmp.ne.s32.totalorder %s262_s0, %s263_s20  ;;  %p267_p2 = scmp.lt.s32.totalorder %s460_s23, %s263_s20 }
  0x12   :  { %p268_p3 = por %p267_p2, %p266_p1 }
  0x14   :  { %p269_p4 = pnand %p268_p3, %p264_p0 }
  0x16   :  { %272 = shalt.err (!%p269_p4)  }
  0x17   :  { %32 = dma.hbm_to_vmem [thread:$0]  %s28_s19, 16, %s30_s15, [#allocation3]  ;;  %v413_v0 = vmov 0.0  }
  0x18   :  { %s468_s26 = smov 0  }
  0x19 LB: > { %p40_p5 = scmp.lt.s32.totalorder %s419_s26, 0  ;;  %s41_s27 = ssub.s32 0, %s419_s26  ;;  %s419_s26 = sphi %s468_s26, %s475_s26   ;;  %v415_v0 = vphi %v413_v0, %v414_v0  }
  0x1a   : > { %s197_s28 = smin.u32 %s419_s26, %s41_s27 }
  0x1b   : > { %s43_s29 = sand.u32 1, %s197_s28  }
  0x1c   : > { %s44_s30 = ssub.s32 0, %s43_s29 }
  0x1d   : > { %s564_s30 = smov (!%p40_p5, %s44_s30), %s43_s29 }
  0x1e   : > { %s46_s3 = scalar_lea.vmem [#allocation2], %s564_s30  ;;  %s47_s4 = scalar_lea.sflag [#allocation3], %s564_s30 }
  0x1f   : > { %407 = dma.done.wait %s47_s4, 16 }
  0x20   : > { %408 = vsyncadd %s47_s4, 4294967280  ;;  %s475_s26 = sadd.s32 1, %s419_s26   ;;  %s56_s5 = ssub.s32 1, %s564_s30 }
  0x21   : > { %p198_p6 = scmp.ge.s32.totalorder %s475_s26, 8  ;;  %p212_p7 = scmp.lt.s32.totalorder %s475_s26, 8 }
  0x22   : > { %s60_s9 = scalar_lea.vmem [#allocation2], %s56_s5  ;;  %s61_s16 = scalar_lea.sflag [#allocation3], %s56_s5 }
  0x23   : > { %s205_s6 = scalar_select %p212_p7, [#allocation5], [#allocation18] }
  0x24   : > { %s206_s7 = scalar_select %p212_p7, %s475_s26, 0 }
  0x25   : > { %s71_s10 = sshll.u32 %s60_s9, 4  ;;  %s72_s10 = int_to_ptr.vmem [resolvable:$true] %s71_s10 }
  0x26   : > { %s58_s8 = sld [smem:[%s205_s6 + %s206_s7]] }
  0x2c   : > { %s59_s13 = scalar_lea.hbm %s559_s1, %s58_s8 }
  0x2d   : > { %s69_s14 = sshll.u32 %s59_s13, 4  ;;  %s70_s14 = int_to_ptr.hbm [resolvable:$true] %s69_s14 }
  0x2e   : > { %s285_s17 = sshra.s32 %s70_s14, 4  ;;  %s286_s17 = int_to_ptr.hbm [resolvable:$true] %s285_s17 }
  0x2f   : > { %s287_s18 = scalar_lea.hbm %s286_s17, 1  ;;  %p292_p11 = scmp.lt.s32.totalorder %s286_s17, %s559_s1 }
  0x30   : > { %p288_p8 = scmp.ne.s32.totalorder %s286_s17, %s287_s18  ;;  %p293_p12 = scmp.lt.s32.totalorder %s460_s23, %s287_s18 }
  0x32   : > { %p289_p9 = pnand %p288_p8, %p212_p7  ;;  %p294_p13 = por %p293_p12, %p292_p11 }
  0x34   : > { %p290_p10 = pneg %p289_p9 }
  0x36   : > { %p295_p0 = pnand %p294_p13, %p290_p10 }
  0x38   : > { %298 = shalt.err (!%p295_p0)  }
  0x39   : > { %s299_s20 = sshra.s32 %s72_s10, 4  ;;  %s431_s22 = smov [#allocation2]   ;;  %s300_s20 = int_to_ptr.vmem [resolvable:$true] %s299_s20 }
  0x3a   : > { %s301_s21 = scalar_lea.vmem %s300_s20, 1  ;;  %s496_s24 = scalar_lea.vmem %s431_s22, 2 }
  0x3b   : > { %p302_p1 = scmp.ne.s32.totalorder %s300_s20, %s301_s21  ;;  %p307_p4 = scmp.lt.s32.totalorder %s496_s24, %s301_s21 }
  0x3d   : > { %p303_p2 = pnand %p302_p1, %p212_p7 }
  0x3f   : > { %p304_p3 = pneg %p303_p2 }
  0x41   : > { %p309_p5 = pnand %p307_p4, %p304_p3 }
  0x43   : > { %312 = shalt.err (!%p309_p5)  }
  0x44   : > { %207 = dma.hbm_to_vmem [thread:$0]  (%p212_p7), %s70_s14, 16, %s72_s10, %s61_s16 }
  0x45   : > { %v75_v1 = vld [vmem:[%s46_s3] sm:$0x1]  ;;  %37 = sbr.rel (!%p198_p6) target bundleno = 25 (0x19), region = 71  ;;  %s199_s27 = sld [smem:[#allocation5 + $0x8]] (%p198_p6) }
  0x46   : > { %v76_v2 = vadd.f32 %v415_v0, %v75_v1  }
  0x48   : > { %v414_v0 = vmov %v76_v2   ;;  %77 = vst [vmem:[#allocation6] sm:$0x1] (%p198_p6), %v76_v2 }
  0x4b   :  { %s81_s4 = scalar_lea.hbm %s559_s1, %s199_s27 }
  0x4c   :  { %s89_s5 = sshll.u32 %s81_s4, 4  ;;  %s90_s5 = int_to_ptr.hbm [resolvable:$true] %s89_s5 }
  0x4d   :  { %s313_s6 = sshra.s32 %s90_s5, 4  ;;  %s314_s6 = int_to_ptr.hbm [resolvable:$true] %s313_s6 }
  0x4e   :  { %s315_s30 = scalar_lea.hbm %s314_s6, 1  ;;  %p318_p8 = scmp.lt.s32.totalorder %s314_s6, %s559_s1 }
  0x4f   :  { %p316_p7 = scmp.ne.s32.totalorder %s314_s6, %s315_s30  ;;  %p319_p9 = scmp.lt.s32.totalorder %s460_s23, %s315_s30 }
  0x51   :  { %p320_p10 = por %p319_p9, %p318_p8 }
  0x53   :  { %p321_p6 = pnand %p320_p10, %p316_p7 }
  0x55   :  { %324 = shalt.err (!%p321_p6)  }
  0x56   :  { %94 = dma.hbm_to_vmem [thread:$0]  %s90_s5, 16, %s30_s15, [#allocation3]  ;;  %v421_v3 = vmov 0.0  }
  0x57   :  { %s517_s26 = smov 0  }
  0x58 LB: > { %p102_p11 = scmp.lt.s32.totalorder %s427_s26, 0  ;;  %s103_s8 = ssub.s32 0, %s427_s26  ;;  %s427_s26 = sphi %s517_s26, %s524_s26   ;;  %v423_v3 = vphi %v421_v3, %v422_v3  }
  0x59   : > { %s200_s9 = smin.u32 %s427_s26, %s103_s8 }
  0x5a   : > { %s105_s10 = sand.u32 1, %s200_s9  }
  0x5b   : > { %s106_s11 = ssub.s32 0, %s105_s10 }
  0x5c   : > { %s566_s11 = smov (!%p102_p11, %s106_s11), %s105_s10 }
  0x5d   : > { %s108_s12 = scalar_lea.vmem [#allocation2], %s566_s11  ;;  %s109_s13 = scalar_lea.sflag [#allocation3], %s566_s11 }
  0x5e   : > { %409 = dma.done.wait %s109_s13, 16 }
  0x5f   : > { %410 = vsyncadd %s109_s13, 4294967280  ;;  %s524_s26 = sadd.s32 1, %s427_s26   ;;  %s118_s14 = ssub.s32 1, %s566_s11 }
  0x60   : > { %p201_p12 = scmp.ge.s32.totalorder %s524_s26, 8  ;;  %p213_p13 = scmp.lt.s32.totalorder %s524_s26, 8 }
  0x61   : > { %s119_s15 = sadd.s32 8, %s524_s26  ;;  %s122_s18 = scalar_lea.vmem [#allocation2], %s118_s14 }
  0x62   : > { %s209_s16 = scalar_select %p213_p13, [#allocation5], [#allocation19] }
  0x63   : > { %s568_s15 = smov (!%p213_p13, %s119_s15), 0  ;;  %s133_s19 = sshll.u32 %s122_s18, 4  ;;  %s134_s19 = int_to_ptr.vmem [resolvable:$true] %s133_s19 }
  0x64   : > { %s120_s17 = sld [smem:[%s209_s16 + %s568_s15]]  ;;  %s123_s25 = scalar_lea.sflag [#allocation3], %s118_s14 }
  0x6a   : > { %s121_s21 = scalar_lea.hbm %s559_s1, %s120_s17 }
  0x6b   : > { %s131_s22 = sshll.u32 %s121_s21, 4  ;;  %s132_s22 = int_to_ptr.hbm [resolvable:$true] %s131_s22 }
  0x6c   : > { %s337_s27 = sshra.s32 %s132_s22, 4  ;;  %s338_s27 = int_to_ptr.hbm [resolvable:$true] %s337_s27 }
  0x6d   : > { %s339_s28 = scalar_lea.hbm %s338_s27, 1  ;;  %p344_p3 = scmp.lt.s32.totalorder %s338_s27, %s559_s1 }
  0x6e   : > { %p340_p0 = scmp.ne.s32.totalorder %s338_s27, %s339_s28  ;;  %p345_p4 = scmp.lt.s32.totalorder %s460_s23, %s339_s28 }
  0x70   : > { %p341_p1 = pnand %p340_p0, %p213_p13  ;;  %p346_p5 = por %p345_p4, %p344_p3 }
  0x72   : > { %p342_p2 = pneg %p341_p1 }
  0x74   : > { %p347_p7 = pnand %p346_p5, %p342_p2 }
  0x76   : > { %350 = shalt.err (!%p347_p7)  }
  0x77   : > { %s351_s5 = sshra.s32 %s134_s19, 4  ;;  %s352_s5 = int_to_ptr.vmem [resolvable:$true] %s351_s5 }
  0x78   : > { %s353_s6 = scalar_lea.vmem %s352_s5, 1 }
  0x79   : > { %p354_p8 = scmp.ne.s32.totalorder %s352_s5, %s353_s6  ;;  %p359_p6 = scmp.lt.s32.totalorder %s496_s24, %s353_s6 }
  0x7b   : > { %p355_p9 = pnand %p354_p8, %p213_p13 }
  0x7d   : > { %p356_p10 = pneg %p355_p9 }
  0x7f   : > { %p361_p11 = pnand %p359_p6, %p356_p10 }
  0x81   : > { %364 = shalt.err (!%p361_p11)  }
  0x82   : > { %211 = dma.hbm_to_vmem [thread:$0]  (%p213_p13), %s132_s22, 16, %s134_s19, %s123_s25 }
  0x83   : > { %v137_v4 = vld [vmem:[%s108_s12] sm:$0x1]  ;;  %99 = sbr.rel (!%p201_p12) target bundleno = 88 (0x58), region = 82  ;;  %s147_s8 = sshll.u32 (%p201_p12), %s560_s2, 4  ;;  %s148_s8 = int_to_ptr.hbm [resolvable:$true] %s147_s8 }
  0x84   : > { %v138_v5 = vadd.f32 %v423_v3, %v137_v4   ;;  %s432_s9 = smov (%p201_p12), [#allocation6]  }
  0x85   :  { %s145_s10 = sshll.u32 (%p201_p12), %s432_s9, 4  ;;  %s146_s10 = int_to_ptr.vmem [resolvable:$true] %s145_s10 }
  0x86   : > { %v422_v3 = vmov %v138_v5   ;;  %139 = vst [vmem:[#allocation6 + $0x1] sm:$0x1] (%p201_p12), %v138_v5 }
  0x87   :  { %150 = dma.vmem_to_hbm [thread:$0]  (%p201_p12), %s146_s10, 32, %s148_s8, [#allocation7]  }
  0x88   :  { %411 = dma.done.wait [#allocation7], 32  }
  0x89   :  { %412 = vsyncadd [#allocation7], 4294967264 }
  0x8a   :  { %155 = vsyncpa [#allocation7], 1 }
  0x8b   :  { %156 = vsyncmov [#allocation3] }
  0x8e   :  { %s157_s11 = vpop.sfrf %156 }
  0x8f   :  { %p202_p13 = scmp.ne.s32.totalorder %s157_s11, 0 }
  0x91   :  { %161 = shalt.err (%p202_p13)  }
  0x92   :  { %163 = vsyncmov [#allocation3 + $0x1] }
  0x95   :  { %s164_s26 = vpop.sfrf %163 }
  0x96   :  { %p203_p12 = scmp.ne.s32.totalorder %s164_s26, 0 }
  0x98   :  { %168 = shalt.err (%p203_p12)  }

</bundles_post_ra>
